<compile_context>
chip_gen: v7x
topology: tpu7x:2x2x1
jax: 0.10.0
libtpu: 0.0.40
codegen_flags: <defaults>
</compile_context>

<pallas_src>
import functools
import math

import jax
import jax.numpy as jnp
from jax import lax
from jax.experimental import pallas as pl
from jax.experimental.pallas import tpu as pltpu

NEG_FILL = -2e20


def _vmem_cap_bytes():
    """0.75x of the physical per-core VMEM (gen-aware; falls back to v7x)."""
    try:
        cap = int(pltpu.get_tpu_info().vmem_capacity_bytes)
    except Exception:
        cap = 64 * 1024 * 1024        # conservative: v7x per-TensorCore VMEM
    return (3 * cap) // 4


def _per_step_bytes(bt, n, m, d, cbytes, obytes):
    """Rough per-grid-step VMEM working set (double-buffered I/O + temps)."""
    f32 = 4
    io = 2 * bt * ((n + m) * d * cbytes      # x1, x2 tiles
                   + (n + m) * f32           # additive mask biases
                   + n * 2 * d * obytes)     # fused output slab
    inter = bt * f32 * (6 * n * m + 3 * (n + m) * d)   # live f32 intermediates
    return io + inter


# ---------------------------------------------------------------------------
# Fused kernel: Linear+ReLU, similarity, masked softmaxes, attention matmuls.
# ---------------------------------------------------------------------------
def _cqattn_kernel(x1_ref, x2_ref, w1_ref, w2_ref, b1_ref, b2_ref, out_ref,
                   *, flip_q2c):
    cdt = x1_ref.dtype
    bt, n, d = x1_ref.shape
    m = x2_ref.shape[1]

    x1 = x1_ref[...]                              # (bt, n, d) compute dtype
    x2 = x2_ref[...]                              # (bt, m, d)

    # ---- Linear (bias=False) + ReLU, fused; weights are VMEM-resident. ----
    # Collapse the batch block so the MXU sees one large-M matmul.
    x1_aug = jnp.maximum(
        jnp.dot(x1.reshape(bt * n, d), w1_ref[...],
                preferred_element_type=jnp.float32), 0.0)
    x2_aug = jnp.maximum(
        jnp.dot(x2.reshape(bt * m, d), w2_ref[...],
                preferred_element_type=jnp.float32), 0.0)
    x1_aug = x1_aug.astype(cdt).reshape(bt, n, d)
    x2_aug = x2_aug.astype(cdt).reshape(bt, m, d)

    # ---- similarity: contract last dims (A @ B^T, MXU-native) -------------
    sim = lax.dot_general(x1_aug, x2_aug,
                          (((2,), (2,)), ((0,), (0,))),
                          preferred_element_type=jnp.float32)    # (bt, n, m)
    # Additive query-side mask (0 keep / -2e20 drop); matches masked_fill_.
    sim = sim + b2_ref[...]

    # ---- softmax over m (torch dim=2); exact normalization, f32 math ------
    row_max = jnp.max(sim, axis=2, keepdims=True)
    row_exp = jnp.exp(sim - row_max)
    sim_row = row_exp / jnp.sum(row_exp, axis=2, keepdims=True)

    # ---- additionally context-masked softmax over n (torch dim=1) ---------
    # Additive stacking can reach ~-4e20 where both masks apply; harmless in
    # f32 and only affects fully-masked degenerate rows/columns whose weights
    # are multiplied by exactly-zero attention anyway.
    sim2 = sim + b1_ref[...]
    col_max = jnp.max(sim2, axis=1, keepdims=True)
    col_exp = jnp.exp(sim2 - col_max)
    sim_col = col_exp / jnp.sum(col_exp, axis=1, keepdims=True)

    sim_row_c = sim_row.astype(cdt)
    sim_col_c = sim_col.astype(cdt)

    # attn_a = sim_row @ x2
    attn_a = lax.dot_general(sim_row_c, x2,
                             (((2,), (1,)), ((0,), (0,))),
                             preferred_element_type=jnp.float32)  # (bt, n, d)

    if flip_q2c:
        # q2c^T = x1^T @ sim_col: the operand that may need an in-register
        # transpose is the (n, d) tile (d < m case); the final dot is A @ B^T.
        q2c_t = lax.dot_general(x1, sim_col_c,
                                (((1,), (1,)), ((0,), (0,))),
                                preferred_element_type=jnp.float32)  # (bt,d,m)
        attn_b = lax.dot_general(sim_row_c, q2c_t.astype(cdt),
                                 (((2,), (2,)), ((0,), (0,))),
                                 preferred_element_type=jnp.float32)  # (bt,n,d)
    else:
        # q2c = sim_col^T @ x1: transposed operand is the (n, m) tile (m <= d).
        q2c = lax.dot_general(sim_col_c, x1,
                              (((1,), (1,)), ((0,), (0,))),
                              preferred_element_type=jnp.float32)     # (bt,m,d)
        attn_b = lax.dot_general(sim_row_c, q2c.astype(cdt),
                                 (((2,), (1,)), ((0,), (0,))),
                                 preferred_element_type=jnp.float32)  # (bt,n,d)

    # Write the two halves of the fused (n, 2d) output slab directly
    # (no jnp.concatenate materialization of an (m, 2d) RHS).
    out_ref[:, :, :d] = attn_a.astype(out_ref.dtype)
    out_ref[:, :, d:] = attn_b.astype(out_ref.dtype)


# ---------------------------------------------------------------------------
# Wrapper.
# ---------------------------------------------------------------------------
def cqattn(x1, x2, x1_mask, x2_mask, w1, w2, *, compute_dtype=jnp.bfloat16):
    """CQattn forward.  w1, w2 are torch-style Linear weights: y = x @ W.T."""
    b, n, d = x1.shape
    m = x2.shape[1]
    out_dtype = x1.dtype
    cdt = jnp.dtype(compute_dtype)
    cbytes = cdt.itemsize
    obytes = jnp.dtype(out_dtype).itemsize

    # Inputs / weights stored in the MXU compute dtype (halves DMA for bf16);
    # no feature-dim padding in HBM — BlockSpec last dims == full array dims.
    x1c = x1.astype(cdt)
    x2c = x2.astype(cdt)
    w1t = jnp.asarray(w1).T.astype(cdt)     # x @ w1t == x @ W1.T
    w2t = jnp.asarray(w2).T.astype(cdt)

    # Additive mask biases: 0 keep / NEG_FILL drop (mirrors masked_fill_).
    bias1 = jnp.where(x1_mask.astype(bool), NEG_FILL, 0.0) \
               .astype(jnp.float32)[:, :, None]              # (b, n, 1)
    bias2 = jnp.where(x2_mask.astype(bool), NEG_FILL, 0.0) \
               .astype(jnp.float32)[:, None, :]              # (b, 1, m)

    # --- batch blocking: biggest divisor of b that fits VMEM and keeps
    # --- >= 2 grid steps (so both v7x TensorCores get work).
    cap = _vmem_cap_bytes()
    per1 = _per_step_bytes(1, n, m, d, cbytes, obytes)
    budget = max(per1, cap // 2)
    max_bt = max(1, budget // per1)
    bt = 1
    for cand in range(1, b + 1):
        if b % cand == 0 and cand <= max_bt and (b // cand >= 2 or b == 1):
            bt = cand
    grid = (b // bt,)

    weights_bytes = 2 * 2 * d * d * cbytes          # two weights, 2 buffers
    est = _per_step_bytes(bt, n, m, d, cbytes, obytes) + weights_bytes
    vmem_limit = int(min(cap, max(2 * est, 8 * 1024 * 1024)))

    kernel = functools.partial(_cqattn_kernel, flip_q2c=(d < m))

    out = pl.pallas_call(
        kernel,
        out_shape=jax.ShapeDtypeStruct((b, n, 2 * d), out_dtype),
        grid_spec=pltpu.PrefetchScalarGridSpec(
            num_scalar_prefetch=0,
            grid=grid,
            in_specs=[
                pl.BlockSpec((bt, n, d), lambda i: (i, 0, 0)),   # x1
                pl.BlockSpec((bt, m, d), lambda i: (i, 0, 0)),   # x2
                pl.BlockSpec((d, d), lambda i: (0, 0)),          # w1 (resident)
                pl.BlockSpec((d, d), lambda i: (0, 0)),          # w2 (resident)
                pl.BlockSpec((bt, n, 1), lambda i: (i, 0, 0)),   # bias1
                pl.BlockSpec((bt, 1, m), lambda i: (i, 0, 0)),   # bias2
            ],
            out_specs=pl.BlockSpec((bt, n, 2 * d), lambda i: (i, 0, 0)),
        ),
        compiler_params=pltpu.CompilerParams(
            dimension_semantics=("parallel",),
            vmem_limit_bytes=vmem_limit),
    )(x1c, x2c, w1t, w2t, bias1, bias2)

    return out[:, :, :d], out[:, :, d:]


# ---------------------------------------------------------------------------
# Pure-JAX reference mirroring the PyTorch forward (true-f32 matmuls).
# ---------------------------------------------------------------------------
def cqattn_ref(x1, x2, x1_mask, x2_mask, w1, w2):
    hp = jax.lax.Precision.HIGHEST
    x1_aug = jax.nn.relu(jnp.einsum("bnd,ed->bne", x1, w1, precision=hp))
    x2_aug = jax.nn.relu(jnp.einsum("bmd,ed->bme", x2, w2, precision=hp))
    sim = jnp.einsum("bnd,bmd->bnm", x1_aug, x2_aug, precision=hp)
    sim = jnp.where(x2_mask[:, None, :], NEG_FILL, sim)
    sim_row = jax.nn.softmax(sim, axis=2)
    attn_a = jnp.einsum("bnm,bmd->bnd", sim_row, x2, precision=hp)
    sim = jnp.where(x1_mask[:, :, None], NEG_FILL, sim)
    sim_col = jax.nn.softmax(sim, axis=1)
    q2c = jnp.einsum("bnm,bnd->bmd", sim_col, x1, precision=hp)
    attn_b = jnp.einsum("bnm,bmd->bnd", sim_row, q2c, precision=hp)
    return attn_a, attn_b


if __name__ == "__main__":
    b, n, m, d = 2, 8, 8, 32

    key = jax.random.PRNGKey(0)
    k1, k2, k3, k4 = jax.random.split(key, 4)

    x1 = jax.random.normal(k1, (b, n, d), jnp.float32)
    x2 = jax.random.normal(k2, (b, m, d), jnp.float32)

    # True == padding / masked (as in torch masked_fill_)
    len1 = jnp.array([6, 8])
    len2 = jnp.array([5, 7])
    x1_mask = jnp.arange(n)[None, :] >= len1[:, None]
    x2_mask = jnp.arange(m)[None, :] >= len2[:, None]

    # deterministic nn.Linear-style init (uniform(-1/sqrt(d), 1/sqrt(d)))
    bound = 1.0 / math.sqrt(d)
    w1 = jax.random.uniform(k3, (d, d), jnp.float32, -bound, bound)
    w2 = jax.random.uniform(k4, (d, d), jnp.float32, -bound, bound)

    ref_a, ref_b = cqattn_ref(x1, x2, x1_mask, x2_mask, w1, w2)

    # 1) f32 compute path — validates kernel logic at tight tolerance.
    a32, b32 = cqattn(x1, x2, x1_mask, x2_mask, w1, w2,
                      compute_dtype=jnp.float32)
    jax.block_until_ready((a32, b32))
    err_f32 = max(float(jnp.max(jnp.abs(a32 - ref_a))),
                  float(jnp.max(jnp.abs(b32 - ref_b))))
    assert err_f32 < 5e-3, f"f32 path max abs err {err_f32}"

    # 2) bf16 MXU path (production default) — bf16-matmul-level tolerance:
    #    every dot rounds its operands to bf16 (f32 accumulation), so a few
    #    1e-2 absolute deviation vs. the true-f32 reference is expected.
    abf, bbf = cqattn(x1, x2, x1_mask, x2_mask, w1, w2)
    jax.block_until_ready((abf, bbf))
    err_bf16 = max(float(jnp.max(jnp.abs(abf - ref_a))),
                   float(jnp.max(jnp.abs(bbf - ref_b))))
    assert err_bf16 < 7e-2, f"bf16 path max abs err {err_bf16}"

    print("KERNEL_OK")
</pallas_src>

<mosaic_0001>
module attributes {stable_mosaic.version = 11 : i64} {
  func.func @_cqattn_kernel(%arg0: i32, %arg1: memref<1x8x32xf32, #tpu.memory_space<vmem>>, %arg2: memref<1x8x32xf32, #tpu.memory_space<vmem>>, %arg3: memref<32x32xf32, #tpu.memory_space<vmem>>, %arg4: memref<32x32xf32, #tpu.memory_space<vmem>>, %arg5: memref<1x8x1xf32, #tpu.memory_space<vmem>>, %arg6: memref<1x1x8xf32, #tpu.memory_space<vmem>>, %arg7: memref<1x8x64xf32, #tpu.memory_space<vmem>>) attributes {dimension_semantics = [#tpu.dimension_semantics<parallel>], iteration_bounds = array<i64: 2>, scalar_prefetch = 0 : i64, scratch_operands = 0 : i64, tpu.core_type = #tpu.core_type<tc>, window_params = [{transform_indices = @transform_0, window_bounds = array<i64: 1, 8, 32>}, {transform_indices = @transform_1, window_bounds = array<i64: 1, 8, 32>}, {pipeline_mode = #tpu.pipeline_mode<synchronous>, transform_indices = @transform_2, window_bounds = array<i64: 32, 32>}, {pipeline_mode = #tpu.pipeline_mode<synchronous>, transform_indices = @transform_3, window_bounds = array<i64: 32, 32>}, {transform_indices = @transform_4, window_bounds = array<i64: 1, 8, 1>}, {transform_indices = @transform_5, window_bounds = array<i64: 1, 1, 8>}, {transform_indices = @transform_6, window_bounds = array<i64: 1, 8, 64>}]} {
    %c0 = arith.constant 0 : index
    %c0_0 = arith.constant 0 : index
    %c0_1 = arith.constant 0 : index
    %0 = vector.load %arg1[%c0, %c0_0, %c0_1] : memref<1x8x32xf32, #tpu.memory_space<vmem>>, vector<1x8x32xf32>
    %c0_2 = arith.constant 0 : index
    %c0_3 = arith.constant 0 : index
    %c0_4 = arith.constant 0 : index
    %1 = vector.load %arg2[%c0_2, %c0_3, %c0_4] : memref<1x8x32xf32, #tpu.memory_space<vmem>>, vector<1x8x32xf32>
    %2 = vector.shape_cast %0 : vector<1x8x32xf32> to vector<8x32xf32>
    %c0_5 = arith.constant 0 : index
    %c0_6 = arith.constant 0 : index
    %3 = vector.load %arg3[%c0_5, %c0_6] : memref<32x32xf32, #tpu.memory_space<vmem>>, vector<32x32xf32>
    %cst = arith.constant dense<0.000000e+00> : vector<8x32xf32>
    %4 = tpu.matmul %2, %3, %cst {dimension_numbers = #tpu.dot_dimension_numbers<[1], [0], [0], [1], [0, 0, 1, 1], [], []>} : vector<8x32xf32>, vector<32x32xf32>, vector<8x32xf32> -> vector<8x32xf32>
    %cst_7 = arith.constant 0.000000e+00 : f32
    %5 = vector.broadcast %cst_7 : f32 to vector<8x32xf32>
    %6 = arith.maximumf %4, %5 : vector<8x32xf32>
    %7 = vector.shape_cast %1 : vector<1x8x32xf32> to vector<8x32xf32>
    %c0_8 = arith.constant 0 : index
    %c0_9 = arith.constant 0 : index
    %8 = vector.load %arg4[%c0_8, %c0_9] : memref<32x32xf32, #tpu.memory_space<vmem>>, vector<32x32xf32>
    %cst_10 = arith.constant dense<0.000000e+00> : vector<8x32xf32>
    %9 = tpu.matmul %7, %8, %cst_10 {dimension_numbers = #tpu.dot_dimension_numbers<[1], [0], [0], [1], [0, 0, 1, 1], [], []>} : vector<8x32xf32>, vector<32x32xf32>, vector<8x32xf32> -> vector<8x32xf32>
    %cst_11 = arith.constant 0.000000e+00 : f32
    %10 = vector.broadcast %cst_11 : f32 to vector<8x32xf32>
    %11 = arith.maximumf %9, %10 : vector<8x32xf32>
    %12 = vector.shape_cast %6 : vector<8x32xf32> to vector<1x8x32xf32>
    %13 = vector.shape_cast %11 : vector<8x32xf32> to vector<1x8x32xf32>
    %cst_12 = arith.constant dense<0.000000e+00> : vector<1x8x8xf32>
    %14 = tpu.matmul %12, %13, %cst_12 {dimension_numbers = #tpu.dot_dimension_numbers<[2], [2], [1], [1], [0, 0, 0, 1, 1, 1], [0], [0]>} : vector<1x8x32xf32>, vector<1x8x32xf32>, vector<1x8x8xf32> -> vector<1x8x8xf32>
    %c0_13 = arith.constant 0 : index
    %c0_14 = arith.constant 0 : index
    %c0_15 = arith.constant 0 : index
    %15 = vector.load %arg6[%c0_13, %c0_14, %c0_15] : memref<1x1x8xf32, #tpu.memory_space<vmem>>, vector<1x1x8xf32>
    %16 = vector.broadcast %15 : vector<1x1x8xf32> to vector<1x8x8xf32>
    %17 = arith.addf %14, %16 : vector<1x8x8xf32>
    %cst_16 = arith.constant dense<0xFF800000> : vector<1x8xf32>
    %18 = vector.multi_reduction <maximumf>, %17, %cst_16 [2] : vector<1x8x8xf32> to vector<1x8xf32>
    %19 = vector.shape_cast %18 : vector<1x8xf32> to vector<1x8x1xf32>
    %20 = vector.broadcast %19 : vector<1x8x1xf32> to vector<1x8x8xf32>
    %21 = arith.subf %17, %20 : vector<1x8x8xf32>
    %22 = math.exp %21 : vector<1x8x8xf32>
    %cst_17 = arith.constant dense<0.000000e+00> : vector<1x8xf32>
    %23 = vector.multi_reduction <add>, %22, %cst_17 [2] : vector<1x8x8xf32> to vector<1x8xf32>
    %24 = vector.shape_cast %23 : vector<1x8xf32> to vector<1x8x1xf32>
    %25 = vector.broadcast %24 : vector<1x8x1xf32> to vector<1x8x8xf32>
    %26 = arith.divf %22, %25 : vector<1x8x8xf32>
    %c0_18 = arith.constant 0 : index
    %c0_19 = arith.constant 0 : index
    %c0_20 = arith.constant 0 : index
    %27 = vector.load %arg5[%c0_18, %c0_19, %c0_20] : memref<1x8x1xf32, #tpu.memory_space<vmem>>, vector<1x8x1xf32>
    %28 = vector.broadcast %27 : vector<1x8x1xf32> to vector<1x8x8xf32>
    %29 = arith.addf %17, %28 : vector<1x8x8xf32>
    %cst_21 = arith.constant dense<0xFF800000> : vector<1x8xf32>
    %30 = vector.multi_reduction <maximumf>, %29, %cst_21 [1] : vector<1x8x8xf32> to vector<1x8xf32>
    %31 = vector.shape_cast %30 : vector<1x8xf32> to vector<1x1x8xf32>
    %32 = vector.broadcast %31 : vector<1x1x8xf32> to vector<1x8x8xf32>
    %33 = arith.subf %29, %32 : vector<1x8x8xf32>
    %34 = math.exp %33 : vector<1x8x8xf32>
    %cst_22 = arith.constant dense<0.000000e+00> : vector<1x8xf32>
    %35 = vector.multi_reduction <add>, %34, %cst_22 [1] : vector<1x8x8xf32> to vector<1x8xf32>
    %36 = vector.shape_cast %35 : vector<1x8xf32> to vector<1x1x8xf32>
    %37 = vector.broadcast %36 : vector<1x1x8xf32> to vector<1x8x8xf32>
    %38 = arith.divf %34, %37 : vector<1x8x8xf32>
    %cst_23 = arith.constant dense<0.000000e+00> : vector<1x8x32xf32>
    %39 = tpu.matmul %26, %1, %cst_23 {dimension_numbers = #tpu.dot_dimension_numbers<[2], [1], [1], [2], [0, 0, 0, 1, 1, 2], [0], [0]>} : vector<1x8x8xf32>, vector<1x8x32xf32>, vector<1x8x32xf32> -> vector<1x8x32xf32>
    %cst_24 = arith.constant dense<0.000000e+00> : vector<1x8x32xf32>
    %40 = tpu.matmul %38, %0, %cst_24 {dimension_numbers = #tpu.dot_dimension_numbers<[1], [1], [2], [2], [0, 0, 0, 2, 1, 2], [0], [0]>} : vector<1x8x8xf32>, vector<1x8x32xf32>, vector<1x8x32xf32> -> vector<1x8x32xf32>
    %cst_25 = arith.constant dense<0.000000e+00> : vector<1x8x32xf32>
    %41 = tpu.matmul %26, %40, %cst_25 {dimension_numbers = #tpu.dot_dimension_numbers<[2], [1], [1], [2], [0, 0, 0, 1, 1, 2], [0], [0]>} : vector<1x8x8xf32>, vector<1x8x32xf32>, vector<1x8x32xf32> -> vector<1x8x32xf32>
    %c0_26 = arith.constant 0 : index
    %c0_27 = arith.constant 0 : index
    %c0_28 = arith.constant 0 : index
    %42 = vector.load %arg7[%c0_26, %c0_27, %c0_28] : memref<1x8x64xf32, #tpu.memory_space<vmem>>, vector<1x8x32xf32>
    tpu.vector_store %arg7[%c0_26, %c0_27, %c0_28], %39 {strides = array<i32>} : memref<1x8x64xf32, #tpu.memory_space<vmem>>, vector<1x8x32xf32>,
    %c0_29 = arith.constant 0 : index
    %c0_30 = arith.constant 0 : index
    %c32 = arith.constant 32 : index
    %43 = vector.load %arg7[%c0_29, %c0_30, %c32] : memref<1x8x64xf32, #tpu.memory_space<vmem>>, vector<1x8x32xf32>
    tpu.vector_store %arg7[%c0_29, %c0_30, %c32], %41 {strides = array<i32>} : memref<1x8x64xf32, #tpu.memory_space<vmem>>, vector<1x8x32xf32>,
    return
  }
  func.func @transform_0(%arg0: i32) -> (i32, i32, i32) {
    %c0_i32 = arith.constant 0 : i32
    %c0_i32_0 = arith.constant 0 : i32
    %c0_i32_1 = arith.constant 0 : i32
    return %arg0, %c0_i32, %c0_i32_0 : i32, i32, i32
  }
  func.func @transform_1(%arg0: i32) -> (i32, i32, i32) {
    %c0_i32 = arith.constant 0 : i32
    %c0_i32_0 = arith.constant 0 : i32
    %c0_i32_1 = arith.constant 0 : i32
    return %arg0, %c0_i32, %c0_i32_0 : i32, i32, i32
  }
  func.func @transform_2(%arg0: i32) -> (i32, i32) {
    %c0_i32 = arith.constant 0 : i32
    %c0_i32_0 = arith.constant 0 : i32
    %c0_i32_1 = arith.constant 0 : i32
    return %c0_i32, %c0_i32_0 : i32, i32
  }
  func.func @transform_3(%arg0: i32) -> (i32, i32) {
    %c0_i32 = arith.constant 0 : i32
    %c0_i32_0 = arith.constant 0 : i32
    %c0_i32_1 = arith.constant 0 : i32
    return %c0_i32, %c0_i32_0 : i32, i32
  }
  func.func @transform_4(%arg0: i32) -> (i32, i32, i32) {
    %c0_i32 = arith.constant 0 : i32
    %c0_i32_0 = arith.constant 0 : i32
    %c0_i32_1 = arith.constant 0 : i32
    return %arg0, %c0_i32, %c0_i32_0 : i32, i32, i32
  }
  func.func @transform_5(%arg0: i32) -> (i32, i32, i32) {
    %c0_i32 = arith.constant 0 : i32
    %c0_i32_0 = arith.constant 0 : i32
    %c0_i32_1 = arith.constant 0 : i32
    return %arg0, %c0_i32, %c0_i32_0 : i32, i32, i32
  }
  func.func @transform_6(%arg0: i32) -> (i32, i32, i32) {
    %c0_i32 = arith.constant 0 : i32
    %c0_i32_0 = arith.constant 0 : i32
    %c0_i32_1 = arith.constant 0 : i32
    return %arg0, %c0_i32, %c0_i32_0 : i32, i32, i32
  }
}

</mosaic_0001>

<bundles_post_ra>
// kernel: tpu_custom_call.1
= control target key start
LH: loop header
LB: loop body
LE: loop exit
PB: predicated region body
PF: predicated region fallthrough
CT: control target
= control target key end

     0   :  { %11 = vsyncpa [#allocation3], 0  ;;  %s1679_s0 = inlined_call_operand.vmem [shape: f32[2,8,32], index: 0, kind: input, shape index: {}]   ;;  %s1680_s1 = inlined_call_operand.hbm [shape: f32[2,8,32], index: 1, kind: input, shape index: {}]   ;;  %s1681_s2 = inlined_call_operand.hbm [shape: f32[32,32], index: 2, kind: input, shape index: {}]   ;;  %s1682_s3 = inlined_call_operand.hbm [shape: f32[32,32], index: 3, kind: input, shape index: {}]   ;;  %s1683_s4 = inlined_call_operand.vmem [shape: f32[2,8,1], index: 4, kind: input, shape index: {}]   ;;  %s1684_s5 = inlined_call_operand.vmem [shape: f32[2,1,8], index: 5, kind: input, shape index: {}]   ;;  %s1685_s6 = inlined_call_operand.hbm [shape: f32[2,8,64], index: 6, kind: output, shape index: {}]  }
   0x1   :  { %13 = vsyncpa [#allocation3 + $0x1], 0 }
   0x2   :  { %14 = vsyncpa [#allocation6], 0 }
   0x3   :  { %15 = vsyncpa [#allocation4], 0 }
   0x4   :  { %17 = vsyncpa [#allocation4 + $0x1], 0  ;;  %s1400_s21 = smov 0   ;;  %s1402_s22 = smov 0  }
   0x5   :  { %s1404_s23 = smov 0   ;;  %s1406_s24 = smov 0  }
   0x6 LB: > { %s1421_s25 = sadd.s32 4294967295, %s1352_s24   ;;  %s1015_s26 = sadd.s32 4294967294, %s1352_s24   ;;  %s1352_s24 = sphi %s1406_s24, %s1705_s24   ;;  %s1348_s23 = sphi %s1404_s23, %s1704_s23   ;;  %s1344_s22 = sphi %s1402_s22, %s1703_s22   ;;  %s1340_s21 = sphi %s1400_s21, %s1702_s21  }
   0x7   : > { %p69_p0 = scmp.ne.s32.totalorder %s1344_s22, %s1340_s21  ;;  %p1686_p1 = scmp.eq.s32.totalorder %s1421_s25, 0 }
   0x8   : > { %p193_p3 = scmp.eq.s32.totalorder %s1015_s26, 1  ;;  %p1016_p5 = scmp.ge.s32.totalorder %s1352_s24, 1 }
   0x9   : > { %p1430_p4 = por %p1686_p1, %p69_p0  ;;  %p200_p7 = scmp.lt.s32.totalorder %s1352_s24, 3 }
   0xa   : > { %p1435_p6 = por %p193_p3, %p69_p0  ;;  %s1354_s30 = smov [#allocation5]  }
   0xb   : > { %s1689_s27 = scalar_select %p1430_p4, 1, 0 }
   0xc   : > { %s1690_s28 = scalar_select %p1435_p6, 1, 0 }
   0xd   : > { %p1440_p8 = pnand %p1016_p5, %p200_p7  ;;  %s212_s7 = sshll.u32 %s1354_s30, 4  ;;  %s1444_s7 = int_to_ptr.vmem [resolvable:$true] %s212_s7 }
   0xe   : > { %s1355_s9 = smov [#allocation7]   ;;  %s1196_s13 = scalar_lea.hbm %s1681_s2, 512 }
   0xf   : > { %p1125_p9 = pneg %p1440_p8  ;;  %s225_s10 = sshll.u32 %s1355_s9, 4  ;;  %s1455_s10 = int_to_ptr.vmem [resolvable:$true] %s225_s10 }
  0x10   : > { %p1197_p12 = scmp.ne.s32.totalorder %s1681_s2, %s1196_s13  ;;  %p1203_p5 = scmp.lt.u32.totalorder %s1196_s13, %s1681_s2 }
  0x11   : > { %p1451_p11 = pnand %p1125_p9, %p1686_p1 }
  0x13   : > { %p1198_p13 = pneg %p1451_p11 }
  0x15   : > { %p1199_p0 = pnand %p1198_p13, %p1197_p12 }
  0x17   : > { %p1200_p3 = pneg %p1199_p0 }
  0x19   : > { %p1205_p7 = pnand %p1203_p5, %p1200_p3 }
  0x1b   : > { %1208 = shalt.err (!%p1205_p7)
}
  0x1c   : > { %s1209_s18 = scalar_lea.vmem %s1444_s7, 512  ;;  %p1217_p2 = scmp.lt.s32.totalorder %s1444_s7, %s1444_s7 }
  0x1d   : > { %p1210_p9 = scmp.ne.s32.totalorder %s1444_s7, %s1209_s18  ;;  %p1218_p12 = scmp.lt.s32.totalorder %s1209_s18, %s1209_s18 }
  0x1f   : > { %p1212_p10 = pnand %p1210_p9, %p1198_p13  ;;  %p1219_p0 = por %p1218_p12, %p1217_p2 }
  0x21   : > { %p1213_p1 = pneg %p1212_p10 }
  0x23   : > { %p1220_p6 = pnand %p1219_p0, %p1213_p1 }
  0x25   : > { %1223 = shalt.err (!%p1220_p6)
}
  0x26   : > { %s1356_s19 = smov 128   ;;  %s1357_s20 = smov 8  }
  0x27   : > { %1128 = dma.hbm_to_vmem [thread:$0]  (!%p1451_p11), %s1681_s2, 512, %s1444_s7, [#allocation6], %s1356_s19, %s1356_s19, %s1357_s20  }
  0x28   : > { %s1224_s12 = scalar_lea.hbm %s1682_s3, 512 }
  0x29   : > { %p1225_p2 = scmp.ne.s32.totalorder %s1682_s3, %s1224_s12  ;;  %p1231_p10 = scmp.lt.u32.totalorder %s1224_s12, %s1682_s3 }
  0x2b   : > { %p1227_p1 = pnand %p1225_p2, %p1198_p13 }
  0x2d   : > { %p1228_p6 = pneg %p1227_p1 }
  0x2f   : > { %p1233_p3 = pnand %p1231_p10, %p1228_p6 }
  0x31   : > { %1236 = shalt.err (!%p1233_p3)
}
  0x32   : > { %s1237_s7 = scalar_lea.vmem %s1455_s10, 512  ;;  %p1245_p12 = scmp.lt.s32.totalorder %s1455_s10, %s1455_s10 }
  0x33   : > { %p1238_p5 = scmp.ne.s32.totalorder %s1455_s10, %s1237_s7  ;;  %p1246_p0 = scmp.lt.s32.totalorder %s1237_s7, %s1237_s7 }
  0x35   : > { %p1240_p7 = pnand %p1238_p5, %p1198_p13  ;;  %p1247_p2 = por %p1246_p0, %p1245_p12 }
  0x37   : > { %p1241_p9 = pneg %p1240_p7 }
  0x39   : > { %p1248_p1 = pnand %p1247_p2, %p1241_p9 }
  0x3b   : > { %1251 = shalt.err (!%p1248_p1)
}
  0x3c   : > { %1131 = dma.hbm_to_vmem [thread:$0]  (!%p1451_p11), %s1682_s3, 512, %s1455_s10, [#allocation6], %s1356_s19, %s1356_s19, %s1357_s20  }
  0x3d   : > { %s1510_s26 = sadd.s32 1, %s1352_s24   ;;  %s56_s8 = sadd.s32 1, %s1348_s23 }
  0x3e   : > { %s53_s30 = ssub.s32 %s1352_s24, %s1510_s26  ;;  %p63_p13 = scmp.ne.s32.totalorder %s1348_s23, %s1344_s22 }
  0x3f   : > { %p54_p6 = scmp.eq.s32.totalorder %s53_s30, 0  ;;  %p64_p10 = scmp.eq.s32.totalorder %s1352_s24, 0 }
  0x40   : > { %p1693_p3 = scmp.eq.s32.totalorder %s1421_s25, 1  ;;  %p1142_p7 = scmp.lt.s32.totalorder %s1352_s24, 2 }
  0x41   : > { %s1526_s11 = scalar_select %p54_p6, %s1348_s23, %s56_s8  }
  0x42   : > { %p1520_p5 = por %p1693_p3, %p63_p13  ;;  %p65_p9 = por %p64_p10, %p63_p13 }
  0x43   : > { %s246_s12 = sand.u32 1, %s1348_s23   ;;  %s1021_s10 = sshll.u32 %s1352_s24, 7 }
  0x44   : > { %s1694_s9 = scalar_select %p1520_p5, 1, 0 }
  0x45   : > { %s1020_s13 = sshll.u32 %s246_s12, 3  ;;  %s1533_s14 = scalar_lea.hbm %s1680_s1, %s1021_s10 }
  0x46   : > { %s250_s15 = scalar_lea.vmem [#allocation2], %s1020_s13  ;;  %p1537_p11 = pnand %p1142_p7, %p65_p9 }
  0x47   : > { %s257_s16 = sshll.u32 %s250_s15, 4  ;;  %s247_s17 = scalar_lea.sflag [#allocation3], %s246_s12  ;;  %s1535_s16 = int_to_ptr.vmem [resolvable:$true] %s257_s16 }
  0x48   : > { %s1252_s18 = scalar_lea.hbm %s1533_s14, 128  ;;  %p1254_p0 = pneg %p1537_p11 }
  0x49   : > { %p1253_p12 = scmp.ne.s32.totalorder %s1533_s14, %s1252_s18  ;;  %s1257_s13 = scalar_lea.hbm %s1680_s1, 256 }
  0x4a   : > { %p1258_p13 = scmp.lt.u32.totalorder %s1533_s14, %s1680_s1  ;;  %p1259_p6 = scmp.lt.u32.totalorder %s1257_s13, %s1252_s18 }
  0x4b   : > { %p1255_p2 = pnand %p1254_p0, %p1253_p12  ;;  %p1261_p3 = scmp.lt.u32.totalorder %s1252_s18, %s1533_s14 }
  0x4c   : > { %p1260_p10 = por %p1259_p6, %p1258_p13 }
  0x4d   : > { %p1256_p1 = pneg %p1255_p2 }
  0x4e   : > { %p1262_p7 = por %p1261_p3, %p1260_p10 }
  0x50   : > { %p1263_p9 = pnand %p1262_p7, %p1256_p1 }
  0x52   : > { %1266 = shalt.err (!%p1263_p9)
}
  0x53   : > { %s1267_s12 = scalar_lea.vmem %s1535_s16, 128  ;;  %s1358_s20 = smov [#allocation2]  }
  0x54   : > { %p1268_p12 = scmp.ne.s32.totalorder %s1535_s16, %s1267_s12  ;;  %s1272_s15 = sshll.u32 %s1358_s20, 4  ;;  %s1273_s15 = int_to_ptr.vmem [resolvable:$false] %s1272_s15 }
  0x55   : > { %s1274_s8 = scalar_lea.vmem %s1273_s15, 256  ;;  %p1275_p4 = scmp.lt.s32.totalorder %s1535_s16, %s1273_s15 }
  0x56   : > { %p1270_p2 = pnand %p1268_p12, %p1254_p0  ;;  %p1276_p13 = scmp.lt.s32.totalorder %s1274_s8, %s1267_s12 }
  0x58   : > { %p1271_p5 = pneg %p1270_p2  ;;  %p1277_p6 = por %p1276_p13, %p1275_p4 }
  0x5a   : > { %p1278_p10 = pnand %p1277_p6, %p1271_p5 }
  0x5c   : > { %1281 = shalt.err (!%p1278_p10)
}
  0x5d   : > { %1135 = dma.hbm_to_vmem [thread:$0]  (!%p1537_p11), %s1533_s14, 128, %s1535_s16, %s247_s17  }
  0x5e   : > { %279 = sbr.rel (%p1440_p8) target bundleno = 1285 (0x505), region = 44  ;;  %s1569_s18 = sand.u32 (!%p1440_p8), 1, %s1344_s22  }
  0x5f   : > { %s1023_s30 = sshll.u32 (!%p1440_p8), %s1569_s18, 3  ;;  %s282_s13 = scalar_lea.sflag (!%p1440_p8), [#allocation3], %s1569_s18 }
  0x60   : > { %s1575_s10 = scalar_lea.vmem (!%p1440_p8), [#allocation2], %s1023_s30  ;;  %p1696_p4 = scmp.ne.s32.totalorder (!%p1440_p8), %s1689_s27, 0 }
  0x65   : > { %1327 = dma.done.wait (%p1696_p4), %s282_s13, 128  }
  0x66   : > { %1329 = vsyncadd (%p1696_p4), %s282_s13, 4294967168  ;;  %p1697_p5 = scmp.eq.s32.totalorder %s1421_s25, 0 }
  0x68   : > { %1331 = dma.done.wait (%p1697_p5), [#allocation6], 1024   ;;  %p1698_p8 = pmov %p1697_p5 }
  0x69   : > { %v1359_v0 = vmov 0.0|0.0   ;;  %p333_p11 = scmp.lt.s32.totalorder %s1421_s25, 1  ;;  %vm1360_vm0 = vmmov 0   ;;  %v1361_v1 = vmov 0.0   ;;  %v425_v2 = vld [vmem:[#allocation7] sm:$0xff]  ;;  %v426_v3 = vld [vmem:[#allocation7 + $0x8] sm:$0xff] }
  0x6a   : > { %1333 = vsyncadd (%p1698_p8), [#allocation6], 4294966272  ;;  %1107 = vmatprep.subr.bf16.mxu1 %v1359_v0  ;;  %1101 = vmatprep.subr.bf16.mxu0 %v1359_v0  ;;  %v346_v4 = vld [vmem:[#allocation5] sm:$0xff]  ;;  %v1108_v5 = vpack.c.bf16 %v426_v3, %v425_v2  ;;  %v347_v6 = vld [vmem:[#allocation5 + $0x8] sm:$0xff]  ;;  %vm350_vm1 = vcmask 261120   ;;  %v1362_v16 = vmov 0  }
  0x6b   : > { %1078 = vmatprep.mubr.msk.f32.mxu1 %vm1360_vm0, %v1361_v1  ;;  %1067 = vmatprep.mubr.msk.f32.mxu0 %vm1360_vm0, %v1361_v1  ;;  %s1591_s27 = scalar_select %p333_p11, %s1421_s25, 1  ;;  %v427_v7 = vld [vmem:[#allocation7 + $0x10] sm:$0xff]  ;;  %v428_v8 = vld [vmem:[#allocation7 + $0x18] sm:$0xff]  ;;  %v1102_v9 = vpack.c.bf16 %v347_v6, %v346_v4  ;;  %vm586_vm2 = vcmask 64512   ;;  %vm877_vm3 = vcmask 523520  }
  0x6c   : > { %v348_v10 = vld [vmem:[#allocation5 + $0x10] sm:$0xff]  ;;  %v349_v11 = vld [vmem:[#allocation5 + $0x18] sm:$0xff]  ;;  %1109 = vmatpush3.bf16.msra.mxu1 %v1108_v5  ;;  %v1111_v12 = vpack.c.bf16 %v428_v8, %v427_v7  ;;  %1187 = vset.pattern.permute.xlu0 %v1362_v16  ;;  %s332_s13 = scalar_lea.vmem [#allocation8], %s1023_s30  ;;  %s880_s30 = scalar_lea.sflag [#allocation4], %s1569_s18 }
  0x6d   : > { %s1027_s29 = sshll.u32 %s1591_s27, 3  ;;  %1103 = vmatpush3.bf16.msra.mxu0 %v1102_v9  ;;  %1110 = vmatprep.subr.bf16.mxu1 %v1359_v0  ;;  %v1105_v13 = vpack.c.bf16 %v349_v11, %v348_v10  ;;  %v345_v14 = vld [vmem:[%s1575_s10] sm:$0xff]  ;;  %s343_s8 = scalar_lea.vmem %s1684_s5, %s1591_s27 }
  0x6e   : > { %1104 = vmatprep.subr.bf16.mxu0 %v1359_v0  ;;  %s336_s7 = scalar_lea.vmem %s1679_s0, %s1027_s29  ;;  %s340_s12 = scalar_lea.vmem %s1683_s4, %s1027_s29  ;;  %v1031_v24 = vld [vmem:[%s343_s8] ss:$0 sm:$0xff] }
  0x6f   : > { %v344_v15 = vld [vmem:[%s336_s7] sm:$0xff]  ;;  %s1363_s10 = smov 32   ;;  %s1038_s27 = sshll.u32 %s1421_s25, 7 }
  0x70   : > { %1112 = vmatpush3.bf16.msra.mxu1 %v1111_v12  ;;  %v598_v17 = vld [vmem:[%s340_s12] sm:$0xff]  ;;  %s893_s29 = sshll.u32 %s332_s13, 4  ;;  %s1635_s7 = scalar_lea.hbm %s1685_s6, %s1038_s27  ;;  %s1637_s29 = int_to_ptr.vmem [resolvable:$true] %s893_s29 }
  0x71   : > { %1106 = vmatpush3.bf16.msra.mxu0 %v1105_v13  ;;  %1086 = vmatprep.subr.mxu1 %v1361_v1  ;;  %s1282_s17 = scalar_lea.vmem %s1637_s29, 128  ;;  %p1699_p1 = scmp.ne.s32.totalorder %s1694_s9, 0 }
  0x72   : > { %1081 = vmatprep.subr.mxu0 %v1361_v1  ;;  %601 = vperm.xlu0 %1187, %v598_v17   ;;  %p1283_p0 = scmp.ne.s32.totalorder %s1637_s29, %s1282_s17  ;;  %s1364_s25 = smov [#allocation8]  }
  0x73   : > { %1079 = vmatmul.mubr.msk.f32.vlgmr.msra.gmra.mrb[0].mxu1 %vm350_vm1, %v345_v14  ;;  %s1286_s19 = sshll.u32 %s1364_s25, 4  ;;  %s1287_s19 = int_to_ptr.vmem [resolvable:$false] %s1286_s19 }
  0x74   : > { %1068 = vmatmul.mubr.msk.f32.vlgmr.msra.gmra.mrb[0].mxu0 %vm350_vm1, %v344_v15  ;;  %1087 = vmatpush3.msra.mxu1 %v345_v14  ;;  %p1284_p3 = pnand %p1283_p0, %p1699_p1  ;;  %s1288_s12 = scalar_lea.vmem %s1287_s19, 256 }
  0x75   : > { %1083 = vmatprep.mubr.msk.f32.mxu0 %vm1360_vm0, %v1361_v1  ;;  %1088 = vmatprep.mubr.msk.f32.mxu1 %vm1360_vm0, %v1361_v1  ;;  %p1289_p9 = scmp.lt.s32.totalorder %s1637_s29, %s1287_s19  ;;  %p1290_p12 = scmp.lt.s32.totalorder %s1288_s12, %s1282_s17 }
  0x76   : > { %1096 = vmatprep.subr.mxu1 %v1361_v1  ;;  %p1285_p7 = pneg %p1284_p3 }
  0x77   : > { %p1291_p2 = por %p1290_p12, %p1289_p9 }
  0x79   : > { %p1292_p13 = pnand %p1291_p2, %p1285_p7 }
  0xf1   : > { %v602_v26 = vpop.permute.xlu0 %601 }
 0x146   : > { %v498_v18 = vpop.f32.mrb[0].mxu1 }
 0x147   : > { %v502_v19 = vmax.f32 %v498_v18, 0.0  ;;  %v1080_v20 = vpop.f32.mrb[1].mxu1  ;;  %v420_v21 = vpop.f32.mrb[0].mxu0 }
 0x148   : > { %v424_v22 = vmax.f32 %v420_v21, 0.0  ;;  %v1069_v23 = vpop.f32.mrb[1].mxu0 }
 0x149   : > { %1082 = vmatpush3.xpose.msk.msra.mxu0 %vm350_vm1, %v502_v19 }
 0x14a   : > { %1091 = vmatprep.subr.mxu0 %v1361_v1 }
 0x14c   : > { %1084 = vmatmul.mubr.msk.f32.vlgmr.msra.gmra.mrb[2].mxu0 %vm350_vm1, %v424_v22 }
 0x14d   : > { %1092 = vmatpush3.msra.mxu0 %v344_v15  ;;  %1093 = vmatprep.mubr.msk.f32.mxu0 %vm1360_vm0, %v1361_v1 }
 0x21f   : > { %v582_v25 = vpop.f32.mrb[2].mxu0 }
 0x220   : > { %v583_v27 = vadd.f32 %v1031_v24, %v582_v25  ;;  %v1085_v28 = vpop.f32.mrb[3].mxu0 }
 0x222   : > { %v604_v29 = vadd.f32 %v602_v26, %v583_v27  ;;  %v587_v30 = vsel %vm586_vm2, %v583_v27, -inf }
 0x223   : > { %588 = vmax.xlane.f32.xlu1 %v587_v30 }
 0x224   : > { %v605_v31 = vsel %vm586_vm2, %v604_v29, -inf }
 0x225   : > { %v606_v32 = vrot.slane %v605_v31, 4 }
 0x227   : > { %v607_v33 = vmax.f32 %v605_v31, %v606_v32 }
 0x229   : > { %v608_v34 = vrot.slane %v607_v33, 2 }
 0x22b   : > { %v609_v35 = vmax.f32 %v607_v33, %v608_v34 }
 0x22d   : > { %v610_v36 = vrot.slane %v609_v35, 1 }
 0x22f   : > { %v611_v37 = vmax.f32 %v609_v35, %v610_v36 }
 0x231   : > { %v612_v38 = vsub.f32 %v604_v29, %v611_v37 }
 0x233   : > { %v613_v39 = vmul.f32 1.442695, %v612_v38 }
 0x235   : > { %1188 = vpow2.f32 %v613_v39 }
 0x23f   : > { %v1189_v40 = vpop.eup %1188 }
 0x240   : > { %v615_v41 = vsel %vm586_vm2, %v1189_v40, 0.0 }
 0x241   : > { %v616_v42 = vrot.slane %v615_v41, 4 }
 0x243   : > { %v617_v43 = vadd.f32 %v616_v42, %v615_v41 }
 0x245   : > { %v618_v44 = vrot.slane %v617_v43, 2 }
 0x247   : > { %v619_v45 = vadd.f32 %v618_v44, %v617_v43 }
 0x249   : > { %v620_v46 = vrot.slane %v619_v45, 1 }
 0x24b   : > { %v621_v47 = vadd.f32 %v620_v46, %v619_v45 }
 0x24d   : > { %1190 = vrcp.f32 %v621_v47 }
 0x257   : > { %v1191_v48 = vpop.eup %1190 }
 0x258   : > { %v623_v49 = vmul.f32 %v1191_v48, %v1189_v40 }
 0x25a   : > { %697 = vxpose.xlu0.b32.start.end [1/1] (short) (narrow) %v623_v49, 8 }
 0x2b0   : > { %v589_v50 = vpop.xlane.xlu1 %588 }
 0x2b1   : > { %v590_v51 = vsub.f32 %v583_v27, %v589_v50 }
 0x2b3   : > { %v591_v52 = vmul.f32 1.442695, %v590_v51 }
 0x2b5   : > { %1192 = vpow2.f32 %v591_v52 }
 0x2bf   : > { %v1193_v53 = vpop.eup %1192 }
 0x2c0   : > { %v593_v54 = vsel %vm586_vm2, %v1193_v53, 0.0 }
 0x2c1   : > { %594 = vadd.xlane.f32.xlu1 %v593_v54 }
 0x2da   : > { %v713_v55 = vpop.trf.xlu0 }
 0x2db   : > { %1094 = vmatmul.mubr.msk.f32.vlgmr.msra.gmra.mrb[4].mxu0 %vm586_vm2, %v713_v55 }
 0x34e   : > { %v595_v56 = vpop.xlane.xlu1 %594 }
 0x34f   : > { %1194 = vrcp.f32 %v595_v56 }
 0x359   : > { %v1195_v57 = vpop.eup %1194 }
 0x35a   : > { %v597_v58 = vmul.f32 %v1195_v57, %v1193_v53 }
 0x35c   : > { %1089 = vmatmul.mubr.msk.f32.vlgmr.msra.gmra.mrb[2].mxu1 %vm586_vm2, %v597_v58 }
 0x35d   : > { %1098 = vmatprep.mubr.msk.f32.mxu1 %vm1360_vm0, %v1361_v1 }
 0x3ae   : > { %v798_v59 = vpop.f32.mrb[4].mxu0 }
 0x3af   : > { %v1095_v60 = vpop.f32.mrb[5].mxu0  ;;  %1097 = vmatpush3.msra.mxu1 %v798_v59 }
 0x3b0   : > { %1099 = vmatmul.mubr.msk.f32.vlgmr.msra.gmra.mrb[4].mxu1 %vm586_vm2, %v597_v58 }
 0x42f   : > { %v693_v61 = vpop.f32.mrb[2].mxu1 }
 0x430   : > { %872 = vst.msk [vmem:[%s332_s13] sm:$0xff] %vm350_vm1, %v693_v61  ;;  %v1090_v62 = vpop.f32.mrb[3].mxu1 }
 0x483   : > { %v868_v63 = vpop.f32.mrb[4].mxu1 }
 0x484   : > { %874 = vrot.lane.b32.xlu1 %v868_v63, %s1363_s10  ;;  %v1100_v0 = vpop.f32.mrb[5].mxu1 }
 0x4f6   : > { %v875_v1 = vpop.permute.xlu1 %874 }
 0x4f7   : > { %878 = vst.msk [vmem:[%s332_s13] sm:$0xff] %vm877_vm3, %v875_v1 }
 0x4f8   : > { %1295 = shalt.err (!%p1292_p13)
}
 0x4f9   : > { %s1296_s18 = scalar_lea.hbm %s1635_s7, 128  ;;  %s1300_s8 = scalar_lea.hbm %s1685_s6, 256 }
 0x4fa   : > { %p1297_p6 = scmp.ne.s32.totalorder %s1635_s7, %s1296_s18  ;;  %p1301_p5 = scmp.lt.u32.totalorder %s1635_s7, %s1685_s6 }
 0x4fb   : > { %p1302_p8 = scmp.lt.u32.totalorder %s1300_s8, %s1296_s18  ;;  %p1304_p0 = scmp.lt.u32.totalorder %s1296_s18, %s1635_s7 }
 0x4fc   : > { %p1298_p10 = pnand %p1297_p6, %p1699_p1 }
 0x4fd   : > { %p1303_p11 = por %p1302_p8, %p1301_p5 }
 0x4fe   : > { %p1299_p4 = pneg %p1298_p10 }
 0x4ff   : > { %p1305_p3 = por %p1304_p0, %p1303_p11 }
 0x501   : > { %p1306_p7 = pnand %p1305_p3, %p1299_p4 }
 0x503   : > { %1309 = shalt.err (!%p1306_p7)
}
 0x504   : > { %1123 = dma.vmem_to_hbm [thread:$0]  (%p1699_p1), %s1637_s29, 128, %s1635_s7, %s880_s30  }
 0x505 PF: > { %s905_s27 = sand.u32 1, %s1340_s21   ;;  %p1700_p9 = scmp.ne.s32.totalorder %s1690_s28, 0 }
 0x506   : > { %p1701_p12 = scmp.ge.s32.totalorder %s1352_s24, 2  ;;  %s906_s14 = scalar_lea.sflag [#allocation4], %s905_s27 }
 0x508   : > { %p1137_p2 = pnand %p1701_p12, %p1700_p9 }
 0x50a   : > { %1335 = dma.done.wait (!%p1137_p2), %s906_s14, 128  }
 0x50b   : > { %1337 = vsyncadd (!%p1137_p2), %s906_s14, 4294967168  ;;  %p20_p13 = scmp.ge.s32.totalorder %s1510_s26, 4   ;;  %s1702_s21 = smov %s1344_s22 }
 0x50c   : > { %s1703_s22 = smov %s1348_s23  ;;  %s1704_s23 = smov %s1526_s11 }
 0x50d   : > { %s1705_s24 = smov %s1510_s26  ;;  %22 = sbr.rel (!%p20_p13) target bundleno = 6 (0x6), region = 106 }
 0x514   :  { %911 = vsyncpa [#allocation3], 1 }
 0x515   :  { %913 = vsyncpa [#allocation3 + $0x1], 1 }
 0x516   :  { %914 = vsyncpa [#allocation6], 1 }
 0x517   :  { %915 = vsyncpa [#allocation4], 1 }
 0x518   :  { %917 = vsyncpa [#allocation4 + $0x1], 1 }

</bundles_post_ra>
